<compile_context>
chip_gen: v6e
topology: v6e:2x2x1
jax: 0.10.0
libtpu: 0.0.40
codegen_flags: <defaults>
</compile_context>

<pallas_src>
import jax
import jax.numpy as jnp
import numpy as np
from jax.experimental import pallas as pl
from jax.experimental.pallas import tpu as pltpu


def _round_up(x, n):
    return ((x + n - 1) // n) * n


def _sublane_multiple(dtype):
    """Minimum row-block multiple for a given dtype (sub-32-bit packs along sublanes)."""
    itemsize = jnp.dtype(dtype).itemsize
    return {4: 8, 2: 16, 1: 32}[itemsize]


# ----------------------------------------------------------------------------
# Kernel
# ----------------------------------------------------------------------------
def _make_mlp_kernel(num_layers, act_dtype):
    """Pallas kernel computing `num_layers` Linear layers (ReLU between all but last).

    act_dtype: dtype of the inter-layer (hidden) activations.  bf16 on v6e/v7x when the
    weights are bf16 (halves inter-layer VMEM traffic; cast would happen before the next
    matmul anyway).  The final logits layer always finishes in f32.
    """

    def kernel(*refs):
        x_ref = refs[0]
        out_ref = refs[-1]
        wb_refs = refs[1:-1]  # alternating (W, b) pairs

        # In-kernel cast: obs stays in its at-rest dtype in HBM (one HBM pass); the
        # cast to the weight dtype happens on the VMEM tile below.
        h = x_ref[...]
        for i in range(num_layers):
            w = wb_refs[2 * i][...]            # (in, out), compute dtype (f32 or bf16)
            b = wb_refs[2 * i + 1][...]        # (1, out), f32
            # MXU matmul in the weight dtype, accumulate in f32; bias add in f32.
            acc = jnp.dot(h.astype(w.dtype), w,
                          preferred_element_type=jnp.float32) + b
            if i < num_layers - 1:
                # Cast before the ReLU: hidden activation lives in act_dtype (bf16 on
                # v6e/v7x), halving vld/vst bytes feeding the next matmul.
                h = jnp.maximum(acc.astype(act_dtype), 0)
            else:
                h = acc                         # f32 logits epilogue
        out_ref[...] = h.astype(out_ref.dtype)

    return kernel


# ----------------------------------------------------------------------------
# Parameter preparation (call ONCE at init, not per forward)
# ----------------------------------------------------------------------------
def _pad_params_lane_dense(params, lane=128):
    """Zero-pad hidden dims to a multiple of `lane` (numerically exact: padded columns
    produce 0, ReLU(0)=0, and the padded rows of the next W are 0).  The first layer's
    input dim and the final layer's output dim are left untouched."""
    n = len(params)
    out = []
    for i, (w, b) in enumerate(params):
        fin, fout = w.shape
        fin_p = fin if i == 0 else _round_up(fin, lane)
        fout_p = fout if i == n - 1 else _round_up(fout, lane)
        if (fin_p, fout_p) != (fin, fout):
            w = jnp.pad(w, ((0, fin_p - fin), (0, fout_p - fout)))
            b = jnp.pad(b, (0, fout_p - fout))
        out.append((w, b))
    return out


def prepare_params(params, *, compute_dtype=jnp.bfloat16, lane=128):
    """Pad hidden dims to lane multiples, cast weights to compute_dtype, reshape biases
    to (1, out) f32.  Hoisted out of the forward path so no pad/convert HLO (or extra
    HBM weight copies) is emitted per step.  Biases stay f32 (f32 epilogue)."""
    padded = _pad_params_lane_dense(params, lane=lane)
    prepared = []
    for (w, b) in padded:
        if compute_dtype is not None and w.dtype != compute_dtype:
            w = w.astype(compute_dtype)
        prepared.append((w, b.reshape(1, -1).astype(jnp.float32)))
    return prepared


# ----------------------------------------------------------------------------
# Forward
# ----------------------------------------------------------------------------
def _choose_block_m(m, sublane, block_m):
    """Pick the row-block size.  Targets 2-8 grid steps (amortize the ~0.35us per-grid-
    step overhead and let the 'parallel' M axis shard across both v7x TensorCores),
    clamped to [1024, 4096]; mid-size M gets 2 balanced steps."""
    if block_m is not None:
        bm = min(block_m, _round_up(m, sublane))
        return max(_round_up(bm, sublane), sublane)
    if m <= 1024:
        return max(_round_up(m, sublane), sublane)          # single step
    if m <= 8192:
        return _round_up(pl.cdiv(m, 2), sublane)            # 2 balanced steps
    return min(_round_up(pl.cdiv(m, 8), sublane), 4096)     # ~8 steps, VMEM-safe cap


def _estimate_vmem_bytes(bm, node_fdim, action_dim, params,
                         x_itemsize, out_itemsize, act_itemsize, weight_bufs):
    xb = 2 * bm * node_fdim * x_itemsize                    # double-buffered input rows
    ob = 2 * bm * action_dim * out_itemsize                 # double-buffered logits
    wb = weight_bufs * sum(w.size * w.dtype.itemsize + b.size * b.dtype.itemsize
                           for (w, b) in params)
    max_fout = max(w.shape[1] for (w, _) in params)
    act = 2 * bm * max_fout * (4 + act_itemsize)            # f32 acc + hidden activation
    return xb + ob + wb + act


def fixed_frag_head_forward(obs, prepared_params, action_dim, *, block_m=None,
                            out_dtype=jnp.float32, hidden_act_dtype=None,
                            single_buffer_weights=False):
    """FixedFragHead trunk: returns logits of shape (-1, action_dim).

    obs:              float array of shape (..., node_fdim); stays in its at-rest dtype
                      (f32 or bf16) -- any cast to the MXU dtype happens inside the kernel.
    prepared_params:  output of prepare_params() (padded + cast ONCE at init).
    block_m:          optional explicit row-block size (sweepable); default auto-picks
                      ~2-8 grid steps clamped to [1024, 4096].
    hidden_act_dtype: dtype for hidden activations; defaults to the weight dtype when
                      weights are bf16 (v6e/v7x), else f32.  Pass jnp.float32 on v5e if
                      the bf16 VPU path proves slower there.
    single_buffer_weights: add pipeline_mode=pl.Buffered(1) to the grid-constant weight
                      BlockSpecs (VMEM headroom on v7x).
    """
    node_fdim = obs.shape[-1]
    x = obs.reshape(-1, node_fdim)
    m = x.shape[0]
    if m == 0:
        return jnp.zeros((0, action_dim), out_dtype)

    w_dtype = prepared_params[0][0].dtype
    assert prepared_params[0][0].shape[0] == node_fdim
    assert prepared_params[-1][0].shape[1] == action_dim

    if hidden_act_dtype is None:
        hidden_act_dtype = w_dtype if w_dtype == jnp.bfloat16 else jnp.float32

    # Row-block: dtype-aware sublane rounding (bf16 packs two rows per sublane).
    sublane = max(_sublane_multiple(x.dtype), _sublane_multiple(out_dtype))
    bm = _choose_block_m(m, sublane, block_m)
    grid = (pl.cdiv(m, bm),)

    num_layers = len(prepared_params)
    kernel = _make_mlp_kernel(num_layers, hidden_act_dtype)

    # BlockSpecs: x/out tiled along rows; weights/biases grid-constant (VMEM resident).
    flat_inputs = [x]
    in_specs = [pl.BlockSpec((bm, node_fdim), lambda i: (i, 0))]
    w_spec_kwargs = {}
    if single_buffer_weights:
        w_spec_kwargs["pipeline_mode"] = pl.Buffered(1)
    for (w, b) in prepared_params:
        flat_inputs.append(w)
        flat_inputs.append(b)
        in_specs.append(pl.BlockSpec(w.shape, lambda i: (0, 0), **w_spec_kwargs))
        in_specs.append(pl.BlockSpec(b.shape, lambda i: (0, 0), **w_spec_kwargs))

    # Cost hint so XLA can schedule neighbors around the custom call.
    flops = 2 * m * sum(w.shape[0] * w.shape[1] for (w, _) in prepared_params)
    bytes_accessed = (m * (node_fdim * x.dtype.itemsize
                           + action_dim * jnp.dtype(out_dtype).itemsize)
                      + sum(w.size * w.dtype.itemsize + b.size * b.dtype.itemsize
                            for (w, b) in prepared_params))
    cost = pl.CostEstimate(flops=int(flops), transcendentals=0,
                           bytes_accessed=int(bytes_accessed))

    # Explicit VMEM budget only when we'd exceed v5e's 16 MiB default scoped limit;
    # cap at v7x's 64 MiB physical per-TensorCore budget.
    weight_bufs = 1 if single_buffer_weights else 2
    vmem_est = _estimate_vmem_bytes(
        bm, node_fdim, action_dim, prepared_params,
        x.dtype.itemsize, jnp.dtype(out_dtype).itemsize,
        jnp.dtype(hidden_act_dtype).itemsize, weight_bufs)
    cp_kwargs = dict(dimension_semantics=("parallel",))
    if vmem_est > 12 * 1024 * 1024:
        cp_kwargs["vmem_limit_bytes"] = min(int(vmem_est * 1.5), 64 * 1024 * 1024)

    out = pl.pallas_call(
        kernel,
        out_shape=jax.ShapeDtypeStruct((m, action_dim), out_dtype),
        grid=grid,
        in_specs=in_specs,
        # Trailing partial block: garbage rows beyond m are computed but their stores
        # are masked; safe because every op is row-independent.  Do NOT add any op that
        # mixes rows within a block (batch-norm/softmax-over-batch/reductions).
        out_specs=pl.BlockSpec((bm, action_dim), lambda i: (i, 0)),
        compiler_params=pltpu.CompilerParams(**cp_kwargs),
        cost_estimate=cost,
    )(*flat_inputs)

    return out  # logits, shape (-1, action_dim)


# ----------------------------------------------------------------------------
# Reference + init helpers (for the self-test)
# ----------------------------------------------------------------------------
def _init_mlp_params(key, node_fdim, hidden_dim, action_dim, hidden_depth):
    """Deterministic PyTorch-nn.Linear-style init (uniform +-1/sqrt(fan_in))."""
    if hidden_depth == 0:
        dims = [(node_fdim, action_dim)]
    else:
        dims = [(node_fdim, hidden_dim)]
        dims += [(hidden_dim, hidden_dim)] * (hidden_depth - 1)
        dims += [(hidden_dim, action_dim)]
    params = []
    for (fan_in, fan_out) in dims:
        key, kw, kb = jax.random.split(key, 3)
        bound = 1.0 / np.sqrt(fan_in)
        w = jax.random.uniform(kw, (fan_in, fan_out), jnp.float32, -bound, bound)
        b = jax.random.uniform(kb, (fan_out,), jnp.float32, -bound, bound)
        params.append((w, b))
    return params


def _reference_forward(obs, params, action_dim):
    x = obs.reshape(-1, obs.shape[-1]).astype(jnp.float32)
    n = len(params)
    for i, (w, b) in enumerate(params):
        x = x @ w + b
        if i < n - 1:
            x = jnp.maximum(x, 0.0)
    return x.reshape(-1, action_dim)


if __name__ == "__main__":
    node_fdim = 32
    hidden_dim = 32
    action_dim = 16
    hidden_depth = 2

    key = jax.random.PRNGKey(0)
    k_obs, k_obs2, k_obs3, k_param = jax.random.split(key, 4)
    raw_params = _init_mlp_params(k_param, node_fdim, hidden_dim, action_dim, hidden_depth)

    # Params prepared ONCE (outside the per-step forward), as the module would at init.
    params_f32 = prepare_params(raw_params, compute_dtype=jnp.float32)
    params_bf16 = prepare_params(raw_params)  # default compute_dtype = bf16 (v6e/v7x)

    # 1) Primary small-shape check (f32 path, auto block_m): obs.view(-1, 32) -> 8 rows.
    obs = jax.random.normal(k_obs, (2, 4, node_fdim), jnp.float32)
    logits = jax.block_until_ready(
        fixed_frag_head_forward(obs, params_f32, action_dim))
    np.testing.assert_allclose(
        np.asarray(logits),
        np.asarray(_reference_forward(obs, raw_params, action_dim)),
        rtol=1e-5, atol=1e-5)

    # 2) Multi-step grid with a trailing partial block (no host-side padding of obs).
    obs2 = jax.random.normal(k_obs2, (5, 40, node_fdim), jnp.float32)   # m = 200
    logits2 = jax.block_until_ready(
        fixed_frag_head_forward(obs2, params_f32, action_dim, block_m=64))  # grid = 4
    np.testing.assert_allclose(
        np.asarray(logits2),
        np.asarray(_reference_forward(obs2, raw_params, action_dim)),
        rtol=1e-5, atol=1e-5)

    # 3) Default bf16 MXU path: f32 obs cast in-kernel, bf16 hidden activations,
    #    f32 accumulation + f32 logits epilogue.
    obs3 = jax.random.normal(k_obs3, (6, 32, node_fdim), jnp.float32)   # m = 192
    logits3 = jax.block_until_ready(
        fixed_frag_head_forward(obs3, params_bf16, action_dim, block_m=64))
    np.testing.assert_allclose(
        np.asarray(logits3),
        np.asarray(_reference_forward(obs3, raw_params, action_dim)),
        rtol=5e-2, atol=5e-2)

    # TODO(synk): FixedCategorical (distribution object: sample/log_prob/entropy) has no
    # tensor-kernel equivalent; the kernel returns the logits that parameterize it.
    print("KERNEL_OK")
</pallas_src>

<mosaic_0001>
module attributes {stable_mosaic.version = 11 : i64} {
  func.func @kernel(%arg0: i32, %arg1: memref<8x32xf32, #tpu.memory_space<vmem>>, %arg2: memref<32x128xf32, #tpu.memory_space<vmem>>, %arg3: memref<1x128xf32, #tpu.memory_space<vmem>>, %arg4: memref<128x128xf32, #tpu.memory_space<vmem>>, %arg5: memref<1x128xf32, #tpu.memory_space<vmem>>, %arg6: memref<128x16xf32, #tpu.memory_space<vmem>>, %arg7: memref<1x16xf32, #tpu.memory_space<vmem>>, %arg8: memref<8x16xf32, #tpu.memory_space<vmem>>) attributes {dimension_semantics = [#tpu.dimension_semantics<parallel>], iteration_bounds = array<i64: 1>, scalar_prefetch = 0 : i64, scratch_operands = 0 : i64, tpu.core_type = #tpu.core_type<tc>, window_params = [{transform_indices = @transform_0, window_bounds = array<i64: 8, 32>}, {pipeline_mode = #tpu.pipeline_mode<synchronous>, transform_indices = @transform_1, window_bounds = array<i64: 32, 128>}, {pipeline_mode = #tpu.pipeline_mode<synchronous>, transform_indices = @transform_2, window_bounds = array<i64: 1, 128>}, {pipeline_mode = #tpu.pipeline_mode<synchronous>, transform_indices = @transform_3, window_bounds = array<i64: 128, 128>}, {pipeline_mode = #tpu.pipeline_mode<synchronous>, transform_indices = @transform_4, window_bounds = array<i64: 1, 128>}, {pipeline_mode = #tpu.pipeline_mode<synchronous>, transform_indices = @transform_5, window_bounds = array<i64: 128, 16>}, {pipeline_mode = #tpu.pipeline_mode<synchronous>, transform_indices = @transform_6, window_bounds = array<i64: 1, 16>}, {transform_indices = @transform_7, window_bounds = array<i64: 8, 16>}]} {
    %c0 = arith.constant 0 : index
    %c0_0 = arith.constant 0 : index
    %0 = vector.load %arg1[%c0, %c0_0] : memref<8x32xf32, #tpu.memory_space<vmem>>, vector<8x32xf32>
    %c0_1 = arith.constant 0 : index
    %c0_2 = arith.constant 0 : index
    %1 = vector.load %arg2[%c0_1, %c0_2] : memref<32x128xf32, #tpu.memory_space<vmem>>, vector<32x128xf32>
    %c0_3 = arith.constant 0 : index
    %c0_4 = arith.constant 0 : index
    %2 = vector.load %arg3[%c0_3, %c0_4] : memref<1x128xf32, #tpu.memory_space<vmem>>, vector<1x128xf32>
    %cst = arith.constant dense<0.000000e+00> : vector<8x128xf32>
    %3 = tpu.matmul %0, %1, %cst {dimension_numbers = #tpu.dot_dimension_numbers<[1], [0], [0], [1], [0, 0, 1, 1], [], []>} : vector<8x32xf32>, vector<32x128xf32>, vector<8x128xf32> -> vector<8x128xf32>
    %4 = vector.broadcast %2 : vector<1x128xf32> to vector<8x128xf32>
    %5 = arith.addf %3, %4 : vector<8x128xf32>
    %cst_5 = arith.constant 0.000000e+00 : f32
    %6 = vector.broadcast %cst_5 : f32 to vector<8x128xf32>
    %7 = arith.maximumf %5, %6 : vector<8x128xf32>
    %c0_6 = arith.constant 0 : index
    %c0_7 = arith.constant 0 : index
    %8 = vector.load %arg4[%c0_6, %c0_7] : memref<128x128xf32, #tpu.memory_space<vmem>>, vector<128x128xf32>
    %c0_8 = arith.constant 0 : index
    %c0_9 = arith.constant 0 : index
    %9 = vector.load %arg5[%c0_8, %c0_9] : memref<1x128xf32, #tpu.memory_space<vmem>>, vector<1x128xf32>
    %cst_10 = arith.constant dense<0.000000e+00> : vector<8x128xf32>
    %10 = tpu.matmul %7, %8, %cst_10 {dimension_numbers = #tpu.dot_dimension_numbers<[1], [0], [0], [1], [0, 0, 1, 1], [], []>} : vector<8x128xf32>, vector<128x128xf32>, vector<8x128xf32> -> vector<8x128xf32>
    %11 = vector.broadcast %9 : vector<1x128xf32> to vector<8x128xf32>
    %12 = arith.addf %10, %11 : vector<8x128xf32>
    %cst_11 = arith.constant 0.000000e+00 : f32
    %13 = vector.broadcast %cst_11 : f32 to vector<8x128xf32>
    %14 = arith.maximumf %12, %13 : vector<8x128xf32>
    %c0_12 = arith.constant 0 : index
    %c0_13 = arith.constant 0 : index
    %15 = vector.load %arg6[%c0_12, %c0_13] : memref<128x16xf32, #tpu.memory_space<vmem>>, vector<128x16xf32>
    %c0_14 = arith.constant 0 : index
    %c0_15 = arith.constant 0 : index
    %16 = vector.load %arg7[%c0_14, %c0_15] : memref<1x16xf32, #tpu.memory_space<vmem>>, vector<1x16xf32>
    %cst_16 = arith.constant dense<0.000000e+00> : vector<8x16xf32>
    %17 = tpu.matmul %14, %15, %cst_16 {dimension_numbers = #tpu.dot_dimension_numbers<[1], [0], [0], [1], [0, 0, 1, 1], [], []>} : vector<8x128xf32>, vector<128x16xf32>, vector<8x16xf32> -> vector<8x16xf32>
    %18 = vector.broadcast %16 : vector<1x16xf32> to vector<8x16xf32>
    %19 = arith.addf %17, %18 : vector<8x16xf32>
    %c0_17 = arith.constant 0 : index
    %c0_18 = arith.constant 0 : index
    %20 = vector.load %arg8[%c0_17, %c0_18] : memref<8x16xf32, #tpu.memory_space<vmem>>, vector<8x16xf32>
    tpu.vector_store %arg8[%c0_17, %c0_18], %19 {strides = array<i32>} : memref<8x16xf32, #tpu.memory_space<vmem>>, vector<8x16xf32>,
    return
  }
  func.func @transform_0(%arg0: i32) -> (i32, i32) {
    %c0_i32 = arith.constant 0 : i32
    %c0_i32_0 = arith.constant 0 : i32
    return %arg0, %c0_i32 : i32, i32
  }
  func.func @transform_1(%arg0: i32) -> (i32, i32) {
    %c0_i32 = arith.constant 0 : i32
    %c0_i32_0 = arith.constant 0 : i32
    %c0_i32_1 = arith.constant 0 : i32
    return %c0_i32, %c0_i32_0 : i32, i32
  }
  func.func @transform_2(%arg0: i32) -> (i32, i32) {
    %c0_i32 = arith.constant 0 : i32
    %c0_i32_0 = arith.constant 0 : i32
    %c0_i32_1 = arith.constant 0 : i32
    return %c0_i32, %c0_i32_0 : i32, i32
  }
  func.func @transform_3(%arg0: i32) -> (i32, i32) {
    %c0_i32 = arith.constant 0 : i32
    %c0_i32_0 = arith.constant 0 : i32
    %c0_i32_1 = arith.constant 0 : i32
    return %c0_i32, %c0_i32_0 : i32, i32
  }
  func.func @transform_4(%arg0: i32) -> (i32, i32) {
    %c0_i32 = arith.constant 0 : i32
    %c0_i32_0 = arith.constant 0 : i32
    %c0_i32_1 = arith.constant 0 : i32
    return %c0_i32, %c0_i32_0 : i32, i32
  }
  func.func @transform_5(%arg0: i32) -> (i32, i32) {
    %c0_i32 = arith.constant 0 : i32
    %c0_i32_0 = arith.constant 0 : i32
    %c0_i32_1 = arith.constant 0 : i32
    return %c0_i32, %c0_i32_0 : i32, i32
  }
  func.func @transform_6(%arg0: i32) -> (i32, i32) {
    %c0_i32 = arith.constant 0 : i32
    %c0_i32_0 = arith.constant 0 : i32
    %c0_i32_1 = arith.constant 0 : i32
    return %c0_i32, %c0_i32_0 : i32, i32
  }
  func.func @transform_7(%arg0: i32) -> (i32, i32) {
    %c0_i32 = arith.constant 0 : i32
    %c0_i32_0 = arith.constant 0 : i32
    return %arg0, %c0_i32 : i32, i32
  }
}

</mosaic_0001>

<bundles_post_ra>
// kernel: tpu_custom_call.1
= control target key start
LH: loop header
LB: loop body
LE: loop exit
PB: predicated region body
PF: predicated region fallthrough
CT: control target
= control target key end

     0   :  { %12 = vsyncpa [#allocation3], 0  ;;  %s708_s0 = inlined_call_operand.vmem [shape: f32[8,32], index: 0, kind: input, shape index: {}]   ;;  %s709_s1 = inlined_call_operand.hbm [shape: f32[32,128], index: 1, kind: input, shape index: {}]   ;;  %s710_s2 = inlined_call_operand.vmem [shape: f32[1,128], index: 2, kind: input, shape index: {}]   ;;  %s711_s3 = inlined_call_operand.vmem [shape: f32[128,128], index: 3, kind: input, shape index: {}]   ;;  %s712_s4 = inlined_call_operand.vmem [shape: f32[1,128], index: 4, kind: input, shape index: {}]   ;;  %s713_s5 = inlined_call_operand.vmem [shape: f32[128,16], index: 5, kind: input, shape index: {}]   ;;  %s714_s6 = inlined_call_operand.vmem [shape: f32[1,16], index: 6, kind: input, shape index: {}]   ;;  %s715_s7 = inlined_call_operand.hbm [shape: f32[8,16], index: 7, kind: output, shape index: {}]  }
   0x1   :  { %13 = vsyncpa [#allocation4], 0  ;;  %s506_s24 = smov [#allocation2]  }
   0x2   :  { %s21_s25 = sshll.u32 %s506_s24, 4  ;;  %s22_s25 = int_to_ptr.vmem [resolvable:$true] %s21_s25 }
   0x3   :  { %s470_s26 = scalar_lea.vmem %s22_s25, 512  ;;  %p475_p1 = scmp.lt.s32.totalorder %s22_s25, %s22_s25 }
   0x4   :  { %p471_p0 = scmp.ne.s32.totalorder %s22_s25, %s470_s26  ;;  %p476_p2 = scmp.lt.s32.totalorder %s470_s26, %s470_s26 }
   0x6   :  { %p477_p3 = por %p476_p2, %p475_p1 }
   0x8   :  { %p478_p4 = pnand %p477_p3, %p471_p0 }
   0xa   :  { %481 = shalt.err (!%p478_p4)
}
   0xb   :  { %s507_s27 = smov 128   ;;  %s508_s28 = smov 8  }
   0xc   :  { %27 = dma.hbm_to_vmem [thread:$0]  %s709_s1, 512, %s22_s25, [#allocation3], %s507_s27, %s507_s27, %s508_s28  }
   0xd   :  { %502 = dma.done.wait [#allocation3], 512  }
   0xe   :  { %503 = vsyncadd [#allocation3], 4294966784  ;;  %v509_v0 = vmov 0.0   ;;  %vm510_vm0 = vmmov 0   ;;  %v45_v1 = vld [vmem:[#allocation2 + $0x18] sm:$0xff]  ;;  %v44_v2 = vld [vmem:[#allocation2 + $0x10] sm:$0xff] }
   0xf   :  { %375 = vmatprep.subr.mxu0 %v509_v0  ;;  %383 = vmatprep.mubr.msk.f32.mxu0 %vm510_vm0, %v509_v0  ;;  %v143_v3 = vld [vmem:[%s711_s3 + $0x78] sm:$0xff]  ;;  %v43_v4 = vld [vmem:[#allocation2 + $0x8] sm:$0xff]  ;;  %v142_v5 = vld [vmem:[%s711_s3 + $0x70] sm:$0xff]  ;;  %vm53_vm1 = vcmask 261120   ;;  %s511_s25 = smov [#allocation5]   ;;  %vm315_vm2 = vcmask 130048  }
  0x10   :  { %386 = vmatprep.subr.mxu1 %v509_v0  ;;  %418 = vmatprep.mubr.msk.f32.mxu1 %vm510_vm0, %v509_v0  ;;  %v141_v6 = vld [vmem:[%s711_s3 + $0x68] sm:$0xff]  ;;  %v42_v7 = vld [vmem:[#allocation2] sm:$0xff]  ;;  %v139_v10 = vld [vmem:[%s711_s3 + $0x58] sm:$0xff]  ;;  %s323_s26 = sshll.u32 %s511_s25, 4  ;;  %s324_s26 = int_to_ptr.vmem [resolvable:$true] %s323_s26 }
  0x11   :  { %376 = vmatpush3.msra.mxu0 %v45_v1  ;;  %387 = vmatpush3.msra.mxu1 %v143_v3  ;;  %v41_v8 = vld [vmem:[%s708_s0] sm:$0xff]  ;;  %v138_v11 = vld [vmem:[%s711_s3 + $0x50] sm:$0xff]  ;;  %v137_v12 = vld [vmem:[%s711_s3 + $0x48] sm:$0xff]  ;;  %p487_p6 = scmp.lt.s32.totalorder %s324_s26, %s324_s26 }
  0x12   :  { %377 = vmatprep.subr.mxu0 %v509_v0  ;;  %388 = vmatprep.subr.mxu1 %v509_v0  ;;  %v140_v9 = vld [vmem:[%s711_s3 + $0x60] sm:$0xff]  ;;  %v135_v14 = vld [vmem:[%s711_s3 + $0x38] sm:$0xff]  ;;  %v134_v15 = vld [vmem:[%s711_s3 + $0x30] sm:$0xff] }
  0x13   :  { %378 = vmatpush3.msra.mxu0 %v44_v2  ;;  %389 = vmatpush3.msra.mxu1 %v142_v5  ;;  %v136_v13 = vld [vmem:[%s711_s3 + $0x40] sm:$0xff]  ;;  %v133_v16 = vld [vmem:[%s711_s3 + $0x28] sm:$0xff]  ;;  %v131_v18 = vld [vmem:[%s711_s3 + $0x18] sm:$0xff] }
  0x14   :  { %379 = vmatprep.subr.mxu0 %v509_v0  ;;  %390 = vmatprep.subr.mxu1 %v509_v0  ;;  %v132_v17 = vld [vmem:[%s711_s3 + $0x20] sm:$0xff]  ;;  %v130_v19 = vld [vmem:[%s711_s3 + $0x10] sm:$0xff]  ;;  %v129_v20 = vld [vmem:[%s711_s3 + $0x8] sm:$0xff] }
  0x15   :  { %380 = vmatpush3.msra.mxu0 %v43_v4  ;;  %391 = vmatpush3.msra.mxu1 %v141_v6  ;;  %v128_v21 = vld [vmem:[%s711_s3] sm:$0xff]  ;;  %v237_v22 = vld [vmem:[%s713_s5 + $0x78] sm:$0xff]  ;;  %v236_v23 = vld [vmem:[%s713_s5 + $0x70] sm:$0xff] }
  0x16   :  { %381 = vmatprep.subr.mxu0 %v509_v0  ;;  %392 = vmatprep.subr.mxu1 %v509_v0  ;;  %v235_v24 = vld [vmem:[%s713_s5 + $0x68] sm:$0xff]  ;;  %v234_v25 = vld [vmem:[%s713_s5 + $0x60] sm:$0xff]  ;;  %v233_v26 = vld [vmem:[%s713_s5 + $0x58] sm:$0xff] }
  0x17   :  { %382 = vmatpush3.msra.mxu0 %v42_v7  ;;  %393 = vmatpush3.msra.mxu1 %v140_v9  ;;  %v232_v27 = vld [vmem:[%s713_s5 + $0x50] sm:$0xff]  ;;  %v231_v28 = vld [vmem:[%s713_s5 + $0x48] sm:$0xff]  ;;  %v230_v29 = vld [vmem:[%s713_s5 + $0x40] sm:$0xff] }
  0x18   :  { %384 = vmatmul.mubr.msk.f32.vlgmr.msra.gmra.mxu0 %vm53_vm1, %v41_v8  ;;  %394 = vmatprep.subr.mxu1 %v509_v0  ;;  %v229_v30 = vld [vmem:[%s713_s5 + $0x38] sm:$0xff]  ;;  %v228_v31 = vld [vmem:[%s713_s5 + $0x30] sm:$0xff]  ;;  %v227_v32 = vld [vmem:[%s713_s5 + $0x28] sm:$0xff] }
  0x19   :  { %421 = vmatprep.subr.mxu0 %v509_v0  ;;  %395 = vmatpush3.msra.mxu1 %v139_v10  ;;  %v226_v33 = vld [vmem:[%s713_s5 + $0x20] sm:$0xff]  ;;  %v225_v34 = vld [vmem:[%s713_s5 + $0x18] sm:$0xff]  ;;  %v224_v40 = vld [vmem:[%s713_s5 + $0x10] sm:$0xff] }
  0x1a   :  { %453 = vmatprep.mubr.msk.f32.mxu0 %vm510_vm0, %v509_v0  ;;  %396 = vmatprep.subr.mxu1 %v509_v0  ;;  %v332_v35 = vld [vmem:[%s710_s2] ss:$0 sm:$0xff]  ;;  %v223_v41 = vld [vmem:[%s713_s5 + $0x8] sm:$0xff] }
  0x1b   :  { %397 = vmatpush3.msra.mxu1 %v138_v11  ;;  %422 = vmatpush3.msra.mxu0 %v237_v22  ;;  %v222_v42 = vld [vmem:[%s713_s5] sm:$0xff]  ;;  %s482_s5 = scalar_lea.vmem %s324_s26, 128 }
  0x1c   :  { %398 = vmatprep.subr.mxu1 %v509_v0  ;;  %423 = vmatprep.subr.mxu0 %v509_v0  ;;  %v334_v43 = vld [vmem:[%s712_s4] ss:$0 sm:$0xff]  ;;  %p483_p5 = scmp.ne.s32.totalorder %s324_s26, %s482_s5  ;;  %p488_p7 = scmp.lt.s32.totalorder %s482_s5, %s482_s5 }
  0x1d   :  { %399 = vmatpush3.msra.mxu1 %v137_v12  ;;  %424 = vmatpush3.msra.mxu0 %v236_v23  ;;  %v335_v48 = vld [vmem:[%s714_s6] ss:$0 sm:$0xff] }
  0x1e   :  { %400 = vmatprep.subr.mxu1 %v509_v0  ;;  %425 = vmatprep.subr.mxu0 %v509_v0  ;;  %p489_p8 = por %p488_p7, %p487_p6 }
  0x1f   :  { %401 = vmatpush3.msra.mxu1 %v136_v13  ;;  %426 = vmatpush3.msra.mxu0 %v235_v24 }
  0x20   :  { %402 = vmatprep.subr.mxu1 %v509_v0  ;;  %427 = vmatprep.subr.mxu0 %v509_v0  ;;  %p490_p9 = pnand %p489_p8, %p483_p5 }
  0x21   :  { %403 = vmatpush3.msra.mxu1 %v135_v14  ;;  %428 = vmatpush3.msra.mxu0 %v234_v25 }
  0x22   :  { %404 = vmatprep.subr.mxu1 %v509_v0  ;;  %429 = vmatprep.subr.mxu0 %v509_v0 }
  0x23   :  { %405 = vmatpush3.msra.mxu1 %v134_v15  ;;  %430 = vmatpush3.msra.mxu0 %v233_v26 }
  0x24   :  { %406 = vmatprep.subr.mxu1 %v509_v0  ;;  %431 = vmatprep.subr.mxu0 %v509_v0 }
  0x25   :  { %407 = vmatpush3.msra.mxu1 %v133_v16  ;;  %432 = vmatpush3.msra.mxu0 %v232_v27 }
  0x26   :  { %408 = vmatprep.subr.mxu1 %v509_v0  ;;  %433 = vmatprep.subr.mxu0 %v509_v0 }
  0x27   :  { %409 = vmatpush3.msra.mxu1 %v132_v17  ;;  %434 = vmatpush3.msra.mxu0 %v231_v28 }
  0x28   :  { %410 = vmatprep.subr.mxu1 %v509_v0  ;;  %435 = vmatprep.subr.mxu0 %v509_v0 }
  0x29   :  { %411 = vmatpush3.msra.mxu1 %v131_v18  ;;  %436 = vmatpush3.msra.mxu0 %v230_v29 }
  0x2a   :  { %412 = vmatprep.subr.mxu1 %v509_v0  ;;  %437 = vmatprep.subr.mxu0 %v509_v0 }
  0x2b   :  { %413 = vmatpush3.msra.mxu1 %v130_v19  ;;  %438 = vmatpush3.msra.mxu0 %v229_v30 }
  0x2c   :  { %414 = vmatprep.subr.mxu1 %v509_v0  ;;  %439 = vmatprep.subr.mxu0 %v509_v0 }
  0x2d   :  { %415 = vmatpush3.msra.mxu1 %v129_v20  ;;  %440 = vmatpush3.msra.mxu0 %v228_v31 }
  0x2e   :  { %416 = vmatprep.subr.mxu1 %v509_v0  ;;  %441 = vmatprep.subr.mxu0 %v509_v0 }
  0x2f   :  { %417 = vmatpush3.msra.mxu1 %v128_v21  ;;  %442 = vmatpush3.msra.mxu0 %v227_v32 }
  0x30   :  { %443 = vmatprep.subr.mxu0 %v509_v0 }
  0x31   :  { %444 = vmatpush3.msra.mxu0 %v226_v33 }
  0x32   :  { %445 = vmatprep.subr.mxu0 %v509_v0 }
  0x33   :  { %446 = vmatpush3.msra.mxu0 %v225_v34 }
  0x34   :  { %447 = vmatprep.subr.mxu0 %v509_v0 }
  0x35   :  { %448 = vmatpush3.msra.mxu0 %v224_v40 }
  0x36   :  { %449 = vmatprep.subr.mxu0 %v509_v0 }
  0x37   :  { %450 = vmatpush3.msra.mxu0 %v223_v41 }
  0x38   :  { %451 = vmatprep.subr.mxu0 %v509_v0 }
  0x39   :  { %452 = vmatpush3.msra.mxu0 %v222_v42 }
  0xd8   :  { %v123_v36 = vpop.f32.mrf.mxu0 }
  0xd9   :  { %v124_v37 = vadd.f32 %v332_v35, %v123_v36 }
  0xda   :  { %v385_v38 = vpop.f32.mrf.mxu0 }
  0xdb   :  { %v127_v39 = vmax.f32 %v124_v37, 0.0 }
  0xdd   :  { %419 = vmatmul.mubr.f32.vlgmr.msra.gmra.mxu1 %v127_v39 }
 0x19d   :  { %v217_v44 = vpop.f32.mrf.mxu1 }
 0x19e   :  { %v218_v45 = vadd.f32 %v334_v43, %v217_v44 }
 0x19f   :  { %v420_v46 = vpop.f32.mrf.mxu1 }
 0x1a0   :  { %v221_v47 = vmax.f32 %v218_v45, 0.0 }
 0x1a2   :  { %454 = vmatmul.mubr.f32.vlgmr.msra.gmra.mxu0 %v221_v47 }
 0x262   :  { %v311_v49 = vpop.f32.mrf.mxu0 }
 0x263   :  { %v312_v50 = vadd.f32 %v335_v48, %v311_v49 }
 0x264   :  { %v455_v51 = vpop.f32.mrf.mxu0 }
 0x265   :  { %316 = vst.msk [vmem:[#allocation5] sm:$0xff] %vm315_vm2, %v312_v50 }
 0x266   :  { %493 = shalt.err (!%p490_p9)
}
 0x267   :  { %326 = dma.vmem_to_hbm [thread:$0]  %s324_s26, 128, %s715_s7, [#allocation4]  }
 0x268   :  { %504 = dma.done.wait [#allocation4], 128  }
 0x269   :  { %505 = vsyncadd [#allocation4], 4294967168 }
 0x26a   :  { %330 = vsyncpa [#allocation3], 1 }
 0x26b   :  { %331 = vsyncpa [#allocation4], 1 }

</bundles_post_ra>
